<compile_context>
chip_gen: v7x
topology: tpu7x:2x2x1
jax: 0.10.0
libtpu: 0.0.40
codegen_flags: <defaults>
</compile_context>

<pallas_src>
import jax
import jax.numpy as jnp
from jax.experimental import pallas as pl
from jax.experimental.pallas import tpu as pltpu


def mlp_kernel(x_ref, w1_ref, b1_ref, w2_ref, b2_ref, o_ref):
    # fc1: (tm, in) @ (in, hid) on the MXU, f32 accumulation.
    h = jnp.dot(x_ref[...], w1_ref[...], preferred_element_type=jnp.float32)
    # bias + tanh epilogue in f32 (b1 broadcasts over rows).
    h = jnp.tanh(h + b1_ref[...])
    # fc2: (tm, hid) @ (hid, out) on the MXU, f32 accumulation.
    o = jnp.dot(h.astype(w2_ref.dtype), w2_ref[...],
                preferred_element_type=jnp.float32)
    o_ref[...] = (o + b2_ref[...]).astype(o_ref.dtype)


def _round_up(n, m):
    return ((n + m - 1) // m) * m


def mlp_pallas(x, w1, b1, w2, b2, *, tm=256, mxu_dtype=jnp.bfloat16):
    B, in_sz = x.shape
    hid = w1.shape[1]
    out_sz = w2.shape[1]
    out_dtype = x.dtype

    # Lane-dense (multiple-of-128) feature dims. Zero padding keeps the math
    # exact: padded input cols hit zero W1 rows, padded hidden units hit zero
    # W2 rows, padded output cols are sliced off below.
    in_p = _round_up(in_sz, 128)
    hid_p = _round_up(hid, 128)
    out_p = _round_up(out_sz, 128)

    # MXU-friendly row tile; don't blow tiny batches past one 128-row tile.
    tm_eff = max(128, min(tm, _round_up(B, 128)))
    grid_m = pl.cdiv(B, tm_eff)
    B_p = grid_m * tm_eff

    # Pad + cast operands. Matmul operands in bf16, biases stay f32.
    xp = jnp.pad(x, ((0, B_p - B), (0, in_p - in_sz))).astype(mxu_dtype)
    w1p = jnp.pad(w1, ((0, in_p - in_sz), (0, hid_p - hid))).astype(mxu_dtype)
    w2p = jnp.pad(w2, ((0, hid_p - hid), (0, out_p - out_sz))).astype(mxu_dtype)
    b1p = jnp.pad(b1, (0, hid_p - hid)).reshape(1, hid_p).astype(jnp.float32)
    b2p = jnp.pad(b2, (0, out_p - out_sz)).reshape(1, out_p).astype(jnp.float32)

    # Advisory cost estimate for the XLA scheduler.
    flops = 2 * B_p * (in_p * hid_p + hid_p * out_p)
    transcendentals = B_p * hid_p  # tanh
    bytes_accessed = int(
        xp.size * xp.dtype.itemsize
        + w1p.size * w1p.dtype.itemsize
        + w2p.size * w2p.dtype.itemsize
        + b1p.size * 4 + b2p.size * 4
        + B_p * out_p * jnp.dtype(out_dtype).itemsize)

    # VMEM budget: x tile double-buffered, weights single-buffered, output
    # double-buffered, plus headroom for the f32 hidden intermediate.
    isz = jnp.dtype(mxu_dtype).itemsize
    tile_bytes = (2 * tm_eff * in_p * isz
                  + in_p * hid_p * isz
                  + hid_p * out_p * isz
                  + (hid_p + out_p) * 4
                  + 2 * tm_eff * out_p * 4
                  + 2 * tm_eff * hid_p * 4)
    vmem_limit = int(min(max(2 * tile_bytes, 32 * 1024 * 1024),
                         64 * 1024 * 1024))  # stay under v7x VMEM/TC

    def build(single_buffer_weights):
        def const_spec(shape):
            # Grid-invariant operand: block index never changes, so a second
            # pipeline buffer is pure VMEM waste.
            if single_buffer_weights:
                return pl.BlockSpec(shape, lambda i: (0, 0),
                                    pipeline_mode=pl.Buffered(1))
            return pl.BlockSpec(shape, lambda i: (0, 0))

        return pl.pallas_call(
            mlp_kernel,
            out_shape=jax.ShapeDtypeStruct((B_p, out_p), out_dtype),
            grid_spec=pltpu.PrefetchScalarGridSpec(
                num_scalar_prefetch=0,
                grid=(grid_m,),
                in_specs=[
                    pl.BlockSpec((tm_eff, in_p), lambda i: (i, 0)),  # x tile
                    const_spec((in_p, hid_p)),                       # W1
                    const_spec((1, hid_p)),                          # b1
                    const_spec((hid_p, out_p)),                      # W2
                    const_spec((1, out_p)),                          # b2
                ],
                out_specs=pl.BlockSpec((tm_eff, out_p), lambda i: (i, 0)),
            ),
            compiler_params=pltpu.CompilerParams(
                dimension_semantics=("parallel",),  # shards across TCs on v7x
                vmem_limit_bytes=vmem_limit),
            cost_estimate=pl.CostEstimate(
                flops=flops,
                transcendentals=transcendentals,
                bytes_accessed=bytes_accessed),
        )

    # TODO(synk): for hidden/input sizes whose resident padded weights exceed
    # ~48 MiB (v7x has 64 MiB VMEM/TC), add a K-reduction grid axis with an
    # f32 scratch accumulator instead of holding whole weights in VMEM.
    try:
        out = build(single_buffer_weights=True)(xp, w1p, b1p, w2p, b2p)
    except Exception:
        # pl.Buffered(1) not supported on this jax/libtpu combo -> default
        # double-buffering (correctness identical, slightly more VMEM).
        out = build(single_buffer_weights=False)(xp, w1p, b1p, w2p, b2p)

    return out[:B, :out_sz]


def mlp_reference(x, w1, b1, w2, b2):
    h = jnp.tanh(x @ w1 + b1)
    return h @ w2 + b2


if __name__ == "__main__":
    # MLP(input_size=32, hidden_size=64, output_size=16), batch=8
    batch, input_size, hidden_size, output_size = 8, 32, 64, 16

    key = jax.random.PRNGKey(0)
    kx, k1, k2, k3, k4 = jax.random.split(key, 5)

    x = jax.random.normal(kx, (batch, input_size), dtype=jnp.float32)
    # Deterministic init (shapes match nn.Linear, stored transposed for x @ W)
    w1 = jax.random.normal(k1, (input_size, hidden_size), jnp.float32) * 0.1
    b1 = jax.random.normal(k2, (hidden_size,), jnp.float32) * 0.1
    w2 = jax.random.normal(k3, (hidden_size, output_size), jnp.float32) * 0.1
    b2 = jax.random.normal(k4, (output_size,), jnp.float32) * 0.1

    out = mlp_pallas(x, w1, b1, w2, b2)
    out = jax.block_until_ready(out)

    ref = mlp_reference(x, w1, b1, w2, b2)
    assert out.shape == (batch, output_size)
    # bf16 MXU operands (f32 accumulation) => widened tolerance vs f32 ref.
    err = float(jnp.max(jnp.abs(out - ref)))
    assert jnp.allclose(out, ref, atol=2e-2, rtol=2e-2), f"max abs err {err}"

    print("KERNEL_OK")
</pallas_src>

<mosaic_0001>
module attributes {stable_mosaic.version = 11 : i64} {
  func.func @mlp_kernel(%arg0: i32, %arg1: memref<128x128xbf16, #tpu.memory_space<vmem>>, %arg2: memref<128x128xbf16, #tpu.memory_space<vmem>>, %arg3: memref<1x128xf32, #tpu.memory_space<vmem>>, %arg4: memref<128x128xbf16, #tpu.memory_space<vmem>>, %arg5: memref<1x128xf32, #tpu.memory_space<vmem>>, %arg6: memref<128x128xf32, #tpu.memory_space<vmem>>) attributes {dimension_semantics = [#tpu.dimension_semantics<parallel>], iteration_bounds = array<i64: 1>, scalar_prefetch = 0 : i64, scratch_operands = 0 : i64, tpu.core_type = #tpu.core_type<tc>, window_params = [{transform_indices = @transform_0, window_bounds = array<i64: 128, 128>}, {pipeline_mode = #tpu.pipeline_mode<synchronous>, transform_indices = @transform_1, window_bounds = array<i64: 128, 128>}, {pipeline_mode = #tpu.pipeline_mode<synchronous>, transform_indices = @transform_2, window_bounds = array<i64: 1, 128>}, {pipeline_mode = #tpu.pipeline_mode<synchronous>, transform_indices = @transform_3, window_bounds = array<i64: 128, 128>}, {pipeline_mode = #tpu.pipeline_mode<synchronous>, transform_indices = @transform_4, window_bounds = array<i64: 1, 128>}, {transform_indices = @transform_5, window_bounds = array<i64: 128, 128>}]} {
    %c0 = arith.constant 0 : index
    %c0_0 = arith.constant 0 : index
    %0 = vector.load %arg1[%c0, %c0_0] : memref<128x128xbf16, #tpu.memory_space<vmem>>, vector<128x128xbf16>
    %c0_1 = arith.constant 0 : index
    %c0_2 = arith.constant 0 : index
    %1 = vector.load %arg2[%c0_1, %c0_2] : memref<128x128xbf16, #tpu.memory_space<vmem>>, vector<128x128xbf16>
    %cst = arith.constant dense<0.000000e+00> : vector<128x128xf32>
    %2 = tpu.matmul %0, %1, %cst {dimension_numbers = #tpu.dot_dimension_numbers<[1], [0], [0], [1], [0, 0, 1, 1], [], []>} : vector<128x128xbf16>, vector<128x128xbf16>, vector<128x128xf32> -> vector<128x128xf32>
    %c0_3 = arith.constant 0 : index
    %c0_4 = arith.constant 0 : index
    %3 = vector.load %arg3[%c0_3, %c0_4] : memref<1x128xf32, #tpu.memory_space<vmem>>, vector<1x128xf32>
    %4 = vector.broadcast %3 : vector<1x128xf32> to vector<128x128xf32>
    %5 = arith.addf %2, %4 : vector<128x128xf32>
    %6 = math.tanh %5 : vector<128x128xf32>
    %7 = arith.truncf %6 : vector<128x128xf32> to vector<128x128xbf16>
    %c0_5 = arith.constant 0 : index
    %c0_6 = arith.constant 0 : index
    %8 = vector.load %arg4[%c0_5, %c0_6] : memref<128x128xbf16, #tpu.memory_space<vmem>>, vector<128x128xbf16>
    %cst_7 = arith.constant dense<0.000000e+00> : vector<128x128xf32>
    %9 = tpu.matmul %7, %8, %cst_7 {dimension_numbers = #tpu.dot_dimension_numbers<[1], [0], [0], [1], [0, 0, 1, 1], [], []>} : vector<128x128xbf16>, vector<128x128xbf16>, vector<128x128xf32> -> vector<128x128xf32>
    %c0_8 = arith.constant 0 : index
    %c0_9 = arith.constant 0 : index
    %10 = vector.load %arg5[%c0_8, %c0_9] : memref<1x128xf32, #tpu.memory_space<vmem>>, vector<1x128xf32>
    %11 = vector.broadcast %10 : vector<1x128xf32> to vector<128x128xf32>
    %12 = arith.addf %9, %11 : vector<128x128xf32>
    %c0_10 = arith.constant 0 : index
    %c0_11 = arith.constant 0 : index
    %13 = vector.load %arg6[%c0_10, %c0_11] : memref<128x128xf32, #tpu.memory_space<vmem>>, vector<128x128xf32>
    tpu.vector_store %arg6[%c0_10, %c0_11], %12 {strides = array<i32>} : memref<128x128xf32, #tpu.memory_space<vmem>>, vector<128x128xf32>,
    return
  }
  func.func @transform_0(%arg0: i32) -> (i32, i32) {
    %c0_i32 = arith.constant 0 : i32
    %c0_i32_0 = arith.constant 0 : i32
    return %arg0, %c0_i32 : i32, i32
  }
  func.func @transform_1(%arg0: i32) -> (i32, i32) {
    %c0_i32 = arith.constant 0 : i32
    %c0_i32_0 = arith.constant 0 : i32
    %c0_i32_1 = arith.constant 0 : i32
    return %c0_i32, %c0_i32_0 : i32, i32
  }
  func.func @transform_2(%arg0: i32) -> (i32, i32) {
    %c0_i32 = arith.constant 0 : i32
    %c0_i32_0 = arith.constant 0 : i32
    %c0_i32_1 = arith.constant 0 : i32
    return %c0_i32, %c0_i32_0 : i32, i32
  }
  func.func @transform_3(%arg0: i32) -> (i32, i32) {
    %c0_i32 = arith.constant 0 : i32
    %c0_i32_0 = arith.constant 0 : i32
    %c0_i32_1 = arith.constant 0 : i32
    return %c0_i32, %c0_i32_0 : i32, i32
  }
  func.func @transform_4(%arg0: i32) -> (i32, i32) {
    %c0_i32 = arith.constant 0 : i32
    %c0_i32_0 = arith.constant 0 : i32
    %c0_i32_1 = arith.constant 0 : i32
    return %c0_i32, %c0_i32_0 : i32, i32
  }
  func.func @transform_5(%arg0: i32) -> (i32, i32) {
    %c0_i32 = arith.constant 0 : i32
    %c0_i32_0 = arith.constant 0 : i32
    return %arg0, %c0_i32 : i32, i32
  }
}

module attributes {stable_mosaic.version = 11 : i64} {
  func.func @mlp_kernel(%arg0: i32, %arg1: memref<128x128xbf16, #tpu.memory_space<vmem>>, %arg2: memref<128x128xbf16, #tpu.memory_space<vmem>>, %arg3: memref<1x128xf32, #tpu.memory_space<vmem>>, %arg4: memref<128x128xbf16, #tpu.memory_space<vmem>>, %arg5: memref<1x128xf32, #tpu.memory_space<vmem>>, %arg6: memref<128x128xf32, #tpu.memory_space<vmem>>) attributes {dimension_semantics = [#tpu.dimension_semantics<parallel>], iteration_bounds = array<i64: 1>, scalar_prefetch = 0 : i64, scratch_operands = 0 : i64, tpu.core_type = #tpu.core_type<tc>, window_params = [{transform_indices = @transform_0, window_bounds = array<i64: 128, 128>}, {pipeline_mode = #tpu.pipeline_mode<synchronous>, transform_indices = @transform_1, window_bounds = array<i64: 128, 128>}, {pipeline_mode = #tpu.pipeline_mode<synchronous>, transform_indices = @transform_2, window_bounds = array<i64: 1, 128>}, {pipeline_mode = #tpu.pipeline_mode<synchronous>, transform_indices = @transform_3, window_bounds = array<i64: 128, 128>}, {pipeline_mode = #tpu.pipeline_mode<synchronous>, transform_indices = @transform_4, window_bounds = array<i64: 1, 128>}, {transform_indices = @transform_5, window_bounds = array<i64: 128, 128>}]} {
    %c0 = arith.constant 0 : index
    %c0_0 = arith.constant 0 : index
    %0 = vector.load %arg1[%c0, %c0_0] : memref<128x128xbf16, #tpu.memory_space<vmem>>, vector<128x128xbf16>
    %c0_1 = arith.constant 0 : index
    %c0_2 = arith.constant 0 : index
    %1 = vector.load %arg2[%c0_1, %c0_2] : memref<128x128xbf16, #tpu.memory_space<vmem>>, vector<128x128xbf16>
    %cst = arith.constant dense<0.000000e+00> : vector<128x128xf32>
    %2 = tpu.matmul %0, %1, %cst {dimension_numbers = #tpu.dot_dimension_numbers<[1], [0], [0], [1], [0, 0, 1, 1], [], []>} : vector<128x128xbf16>, vector<128x128xbf16>, vector<128x128xf32> -> vector<128x128xf32>
    %c0_3 = arith.constant 0 : index
    %c0_4 = arith.constant 0 : index
    %3 = vector.load %arg3[%c0_3, %c0_4] : memref<1x128xf32, #tpu.memory_space<vmem>>, vector<1x128xf32>
    %4 = vector.broadcast %3 : vector<1x128xf32> to vector<128x128xf32>
    %5 = arith.addf %2, %4 : vector<128x128xf32>
    %6 = math.tanh %5 : vector<128x128xf32>
    %7 = arith.truncf %6 : vector<128x128xf32> to vector<128x128xbf16>
    %c0_5 = arith.constant 0 : index
    %c0_6 = arith.constant 0 : index
    %8 = vector.load %arg4[%c0_5, %c0_6] : memref<128x128xbf16, #tpu.memory_space<vmem>>, vector<128x128xbf16>
    %cst_7 = arith.constant dense<0.000000e+00> : vector<128x128xf32>
    %9 = tpu.matmul %7, %8, %cst_7 {dimension_numbers = #tpu.dot_dimension_numbers<[1], [0], [0], [1], [0, 0, 1, 1], [], []>} : vector<128x128xbf16>, vector<128x128xbf16>, vector<128x128xf32> -> vector<128x128xf32>
    %c0_8 = arith.constant 0 : index
    %c0_9 = arith.constant 0 : index
    %10 = vector.load %arg5[%c0_8, %c0_9] : memref<1x128xf32, #tpu.memory_space<vmem>>, vector<1x128xf32>
    %11 = vector.broadcast %10 : vector<1x128xf32> to vector<128x128xf32>
    %12 = arith.addf %9, %11 : vector<128x128xf32>
    %c0_10 = arith.constant 0 : index
    %c0_11 = arith.constant 0 : index
    %13 = vector.load %arg6[%c0_10, %c0_11] : memref<128x128xf32, #tpu.memory_space<vmem>>, vector<128x128xf32>
    tpu.vector_store %arg6[%c0_10, %c0_11], %12 {strides = array<i32>} : memref<128x128xf32, #tpu.memory_space<vmem>>, vector<128x128xf32>,
    return
  }
  func.func @transform_0(%arg0: i32) -> (i32, i32) {
    %c0_i32 = arith.constant 0 : i32
    %c0_i32_0 = arith.constant 0 : i32
    return %arg0, %c0_i32 : i32, i32
  }
  func.func @transform_1(%arg0: i32) -> (i32, i32) {
    %c0_i32 = arith.constant 0 : i32
    %c0_i32_0 = arith.constant 0 : i32
    %c0_i32_1 = arith.constant 0 : i32
    return %c0_i32, %c0_i32_0 : i32, i32
  }
  func.func @transform_2(%arg0: i32) -> (i32, i32) {
    %c0_i32 = arith.constant 0 : i32
    %c0_i32_0 = arith.constant 0 : i32
    %c0_i32_1 = arith.constant 0 : i32
    return %c0_i32, %c0_i32_0 : i32, i32
  }
  func.func @transform_3(%arg0: i32) -> (i32, i32) {
    %c0_i32 = arith.constant 0 : i32
    %c0_i32_0 = arith.constant 0 : i32
    %c0_i32_1 = arith.constant 0 : i32
    return %c0_i32, %c0_i32_0 : i32, i32
  }
  func.func @transform_4(%arg0: i32) -> (i32, i32) {
    %c0_i32 = arith.constant 0 : i32
    %c0_i32_0 = arith.constant 0 : i32
    %c0_i32_1 = arith.constant 0 : i32
    return %c0_i32, %c0_i32_0 : i32, i32
  }
  func.func @transform_5(%arg0: i32) -> (i32, i32) {
    %c0_i32 = arith.constant 0 : i32
    %c0_i32_0 = arith.constant 0 : i32
    return %arg0, %c0_i32 : i32, i32
  }
}

</mosaic_0001>

<bundles_post_ra>
// kernel: tpu_custom_call.1
= control target key start
LH: loop header
LB: loop body
LE: loop exit
PB: predicated region body
PF: predicated region fallthrough
CT: control target
= control target key end

     0   :  { %10 = vsyncpa [#allocation3], 0  ;;  %s909_s0 = inlined_call_operand.hbm [shape: bf16[128,128], index: 0, kind: input, shape index: {}]   ;;  %s910_s1 = inlined_call_operand.hbm [shape: bf16[128,128], index: 1, kind: input, shape index: {}]   ;;  %s911_s2 = inlined_call_operand.vmem [shape: f32[1,128], index: 2, kind: input, shape index: {}]   ;;  %s912_s3 = inlined_call_operand.hbm [shape: bf16[128,128], index: 3, kind: input, shape index: {}]   ;;  %s913_s4 = inlined_call_operand.vmem [shape: f32[1,128], index: 4, kind: input, shape index: {}]   ;;  %s914_s5 = inlined_call_operand.hbm [shape: f32[128,128], index: 5, kind: output, shape index: {}]  }
   0x1   :  { %11 = vsyncpa [#allocation6], 0 }
   0x2   :  { %12 = vsyncpa [#allocation4], 0  ;;  %s801_s18 = smov [#allocation5]   ;;  %s802_s20 = smov [#allocation2]  }
   0x3   :  { %s30_s19 = sshll.u32 %s801_s18, 4  ;;  %s18_s21 = sshll.u32 %s802_s20, 4  ;;  %s31_s19 = int_to_ptr.vmem [resolvable:$true] %s30_s19  ;;  %s839_s21 = int_to_ptr.vmem [resolvable:$true] %s18_s21 }
   0x4   :  { %s707_s24 = scalar_lea.hbm %s910_s1, 1024 }
   0x5   :  { %p708_p0 = scmp.ne.s32.totalorder %s910_s1, %s707_s24  ;;  %p711_p1 = scmp.lt.u32.totalorder %s707_s24, %s910_s1 }
   0x7   :  { %p713_p2 = pnand %p711_p1, %p708_p0 }
   0x9   :  { %716 = shalt.err (!%p713_p2)
}
   0xa   :  { %s717_s29 = scalar_lea.vmem %s31_s19, 1024  ;;  %p722_p4 = scmp.lt.s32.totalorder %s31_s19, %s31_s19 }
   0xb   :  { %p718_p3 = scmp.ne.s32.totalorder %s31_s19, %s717_s29  ;;  %p723_p5 = scmp.lt.s32.totalorder %s717_s29, %s717_s29 }
   0xd   :  { %p724_p6 = por %p723_p5, %p722_p4 }
   0xf   :  { %p725_p7 = pnand %p724_p6, %p718_p3 }
  0x11   :  { %728 = shalt.err (!%p725_p7)
}
  0x12   :  { %s803_s30 = smov 64   ;;  %s804_s6 = smov 4  }
  0x13   :  { %36 = dma.hbm_to_vmem [thread:$0]  %s910_s1, 1024, %s31_s19, [#allocation6], %s803_s30, %s803_s30, %s804_s6  }
  0x14   :  { %s729_s11 = scalar_lea.hbm %s909_s0, 1024 }
  0x15   :  { %p730_p8 = scmp.ne.s32.totalorder %s909_s0, %s729_s11  ;;  %p733_p9 = scmp.lt.u32.totalorder %s729_s11, %s909_s0 }
  0x17   :  { %p735_p10 = pnand %p733_p9, %p730_p8 }
  0x19   :  { %738 = shalt.err (!%p735_p10)
}
  0x1a   :  { %s739_s16 = scalar_lea.vmem %s839_s21, 1024  ;;  %p744_p12 = scmp.lt.s32.totalorder %s839_s21, %s839_s21 }
  0x1b   :  { %p740_p11 = scmp.ne.s32.totalorder %s839_s21, %s739_s16  ;;  %p745_p13 = scmp.lt.s32.totalorder %s739_s16, %s739_s16 }
  0x1d   :  { %p746_p0 = por %p745_p13, %p744_p12 }
  0x1f   :  { %p747_p1 = pnand %p746_p0, %p740_p11 }
  0x21   :  { %750 = shalt.err (!%p747_p1)
}
  0x22   :  { %24 = dma.hbm_to_vmem [thread:$0]  %s909_s0, 1024, %s839_s21, [#allocation3], %s803_s30, %s803_s30, %s804_s6  }
  0x23   :  { %s805_s18 = smov [#allocation7]   ;;  %s751_s23 = scalar_lea.hbm %s912_s3, 1024 }
  0x24   :  { %s44_s19 = sshll.u32 %s805_s18, 4  ;;  %p752_p2 = scmp.ne.s32.totalorder %s912_s3, %s751_s23  ;;  %s45_s19 = int_to_ptr.vmem [resolvable:$true] %s44_s19 }
  0x25   :  { %p755_p3 = scmp.lt.u32.totalorder %s751_s23, %s912_s3 }
  0x27   :  { %p757_p4 = pnand %p755_p3, %p752_p2 }
  0x29   :  { %760 = shalt.err (!%p757_p4)
}
  0x2a   :  { %s761_s28 = scalar_lea.vmem %s45_s19, 1024  ;;  %p766_p6 = scmp.lt.s32.totalorder %s45_s19, %s45_s19 }
  0x2b   :  { %p762_p5 = scmp.ne.s32.totalorder %s45_s19, %s761_s28  ;;  %p767_p7 = scmp.lt.s32.totalorder %s761_s28, %s761_s28 }
  0x2d   :  { %p768_p8 = por %p767_p7, %p766_p6 }
  0x2f   :  { %p769_p9 = pnand %p768_p8, %p762_p5 }
  0x31   :  { %772 = shalt.err (!%p769_p9)
}
  0x32   :  { %50 = dma.hbm_to_vmem [thread:$0]  %s912_s3, 1024, %s45_s19, [#allocation6], %s803_s30, %s803_s30, %s804_s6  }
  0x33   :  { %795 = dma.done.wait [#allocation3], 1024  }
  0x34   :  { %796 = vsyncadd [#allocation3], 4294966272 }
  0x35   :  { %797 = dma.done.wait [#allocation6], 2048  }
  0x36   :  { %798 = vsyncadd [#allocation6], 4294965248  ;;  %v651_v0 = vld [vmem:[#allocation5] sm:$0xff]   ;;  %v652_v1 = vld [vmem:[#allocation5 + $0x8] sm:$0xff]  }
  0x37   :  { %579 = vmatprep.subr.bf16.mxu0 %v651_v0  ;;  %v653_v2 = vld [vmem:[#allocation5 + $0x10] sm:$0xff]   ;;  %v654_v3 = vld [vmem:[#allocation5 + $0x18] sm:$0xff]   ;;  %v659_v4 = vld [vmem:[#allocation2] sm:$0xff]  }
  0x38   :  { %580 = vmatpush3.bf16.msra.mxu0 %v651_v0  ;;  %595 = vmatprep.mubr.bf16.mxu0 %v659_v4  ;;  %v655_v5 = vld [vmem:[#allocation5 + $0x20] sm:$0xff]   ;;  %v656_v6 = vld [vmem:[#allocation5 + $0x28] sm:$0xff]   ;;  %v657_v9 = vld [vmem:[#allocation5 + $0x30] sm:$0xff]  }
  0x39   :  { %581 = vmatprep.subr.bf16.mxu0 %v652_v1  ;;  %v667_v7 = vld [vmem:[#allocation7] sm:$0xff]   ;;  %v668_v8 = vld [vmem:[#allocation7 + $0x8] sm:$0xff]   ;;  %v669_v10 = vld [vmem:[#allocation7 + $0x10] sm:$0xff]  }
  0x3a   :  { %611 = vmatprep.subr.bf16.mxu1 %v667_v7  ;;  %v658_v11 = vld [vmem:[#allocation5 + $0x38] sm:$0xff]   ;;  %v660_v12 = vld [vmem:[#allocation2 + $0x8] sm:$0xff]   ;;  %v661_v13 = vld [vmem:[#allocation2 + $0x10] sm:$0xff]  }
  0x3b   :  { %612 = vmatpush3.bf16.msra.mxu1 %v667_v7  ;;  %v662_v14 = vld [vmem:[#allocation2 + $0x18] sm:$0xff]   ;;  %v663_v15 = vld [vmem:[#allocation2 + $0x20] sm:$0xff]   ;;  %v664_v16 = vld [vmem:[#allocation2 + $0x28] sm:$0xff]  }
  0x3c   :  { %582 = vmatpush3.bf16.msra.mxu0 %v652_v1  ;;  %613 = vmatprep.subr.bf16.mxu1 %v668_v8  ;;  %v665_v17 = vld [vmem:[#allocation2 + $0x30] sm:$0xff]   ;;  %v666_v18 = vld [vmem:[#allocation2 + $0x38] sm:$0xff]   ;;  %v671_v20 = vld [vmem:[#allocation7 + $0x20] sm:$0xff]  }
  0x3d   :  { %583 = vmatprep.subr.bf16.mxu0 %v653_v2  ;;  %v670_v19 = vld [vmem:[#allocation7 + $0x18] sm:$0xff]   ;;  %v672_v21 = vld [vmem:[#allocation7 + $0x28] sm:$0xff]   ;;  %v673_v22 = vld [vmem:[#allocation7 + $0x30] sm:$0xff]  }
  0x3e   :  { %v674_v23 = vld [vmem:[#allocation7 + $0x38] sm:$0xff]   ;;  %v521_v24 = vld [vmem:[%s911_s2] ss:$0 sm:$0xff] }
  0x3f   :  { %614 = vmatpush3.bf16.msra.mxu1 %v668_v8 }
  0x40   :  { %584 = vmatpush3.bf16.msra.mxu0 %v653_v2  ;;  %615 = vmatprep.subr.bf16.mxu1 %v669_v10 }
  0x41   :  { %585 = vmatprep.subr.bf16.mxu0 %v654_v3 }
  0x43   :  { %616 = vmatpush3.bf16.msra.mxu1 %v669_v10 }
  0x44   :  { %586 = vmatpush3.bf16.msra.mxu0 %v654_v3  ;;  %617 = vmatprep.subr.bf16.mxu1 %v670_v19 }
  0x45   :  { %587 = vmatprep.subr.bf16.mxu0 %v655_v5 }
  0x47   :  { %618 = vmatpush3.bf16.msra.mxu1 %v670_v19 }
  0x48   :  { %588 = vmatpush3.bf16.msra.mxu0 %v655_v5  ;;  %619 = vmatprep.subr.bf16.mxu1 %v671_v20 }
  0x49   :  { %589 = vmatprep.subr.bf16.mxu0 %v656_v6 }
  0x4b   :  { %620 = vmatpush3.bf16.msra.mxu1 %v671_v20 }
  0x4c   :  { %590 = vmatpush3.bf16.msra.mxu0 %v656_v6  ;;  %621 = vmatprep.subr.bf16.mxu1 %v672_v21 }
  0x4d   :  { %591 = vmatprep.subr.bf16.mxu0 %v657_v9 }
  0x4f   :  { %622 = vmatpush3.bf16.msra.mxu1 %v672_v21 }
  0x50   :  { %592 = vmatpush3.bf16.msra.mxu0 %v657_v9  ;;  %623 = vmatprep.subr.bf16.mxu1 %v673_v22 }
  0x51   :  { %593 = vmatprep.subr.bf16.mxu0 %v658_v11 }
  0x53   :  { %624 = vmatpush3.bf16.msra.mxu1 %v673_v22 }
  0x54   :  { %594 = vmatpush3.bf16.msra.mxu0 %v658_v11  ;;  %625 = vmatprep.subr.bf16.mxu1 %v674_v23 }
  0x57   :  { %596 = vmatmul.mubr.bf16.vlgmr.msra.gmra.mrb[0].mxu0 %v660_v12  ;;  %626 = vmatpush3.bf16.msra.mxu1 %v674_v23 }
  0x58   :  { %599 = vmatprep.mubr.bf16.mxu0 %v661_v13 }
  0x5f   :  { %600 = vmatmul.mubr.bf16.gmra.mrb[4].mxu0 %v662_v14 }
  0x60   :  { %603 = vmatprep.mubr.bf16.mxu0 %v663_v15 }
  0x67   :  { %604 = vmatmul.mubr.bf16.gmra.mrb[8].mxu0 %v664_v16 }
  0x68   :  { %607 = vmatprep.mubr.bf16.mxu0 %v665_v17  ;;  %v538_v17 = vld [vmem:[%s913_s4] ss:$0 sm:$0xff]  ;;  %s806_s4 = smov [#allocation8]  }
  0x69   :  { %s508_s6 = sshll.u32 %s806_s4, 4  ;;  %s509_s6 = int_to_ptr.vmem [resolvable:$true] %s508_s6 }
  0x6a   :  { %s773_s7 = scalar_lea.vmem %s509_s6, 2048  ;;  %p778_p11 = scmp.lt.s32.totalorder %s509_s6, %s509_s6 }
  0x6b   :  { %p774_p10 = scmp.ne.s32.totalorder %s509_s6, %s773_s7  ;;  %p779_p12 = scmp.lt.s32.totalorder %s773_s7, %s773_s7 }
  0x6d   :  { %p780_p13 = por %p779_p12, %p778_p11 }
  0x6f   :  { %608 = vmatmul.mubr.bf16.gmra.mrb[12].mxu0 %v666_v18  ;;  %p781_p0 = pnand %p780_p13, %p774_p10 }
 0x12a   :  { %v597_v25 = vpop.f32.mrb[0].mxu0 }
 0x12b   :  { %v241_v26 = vadd.f32 %v597_v25, %v521_v24  ;;  %v232_v27 = vpop.f32.mrb[1].mxu0 }
 0x12c   :  { %v233_v28 = vadd.f32 %v521_v24, %v232_v27  ;;  %v598_v29 = vpop.f32.mrb[2].mxu0 }
 0x12d   :  { %675 = vtanh.f32 %v241_v26  ;;  %v244_v30 = vadd.f32 %v598_v29, %v521_v24  ;;  %v235_v31 = vpop.f32.mrb[3].mxu0 }
 0x12e   :  { %677 = vtanh.f32 %v233_v28  ;;  %v236_v32 = vadd.f32 %v521_v24, %v235_v31 }
 0x12f   :  { %679 = vtanh.f32 %v244_v30 }
 0x130   :  { %681 = vtanh.f32 %v236_v32 }
 0x132   :  { %v601_v33 = vpop.f32.mrb[4].mxu0 }
 0x133   :  { %v257_v34 = vadd.f32 %v601_v33, %v521_v24  ;;  %v248_v35 = vpop.f32.mrb[5].mxu0 }
 0x134   :  { %v249_v36 = vadd.f32 %v521_v24, %v248_v35  ;;  %v602_v37 = vpop.f32.mrb[6].mxu0 }
 0x135   :  { %683 = vtanh.f32 %v257_v34  ;;  %v260_v38 = vadd.f32 %v602_v37, %v521_v24  ;;  %v251_v39 = vpop.f32.mrb[7].mxu0 }
 0x136   :  { %685 = vtanh.f32 %v249_v36  ;;  %v252_v40 = vadd.f32 %v521_v24, %v251_v39 }
 0x137   :  { %v676_v41 = vpop.eup %675  ;;  %687 = vtanh.f32 %v260_v38 }
 0x138   :  { %v678_v42 = vpop.eup %677  ;;  %689 = vtanh.f32 %v252_v40 }
 0x139   :  { %v680_v43 = vpop.eup %679 }
 0x13a   :  { %v682_v44 = vpop.eup %681  ;;  %v605_v45 = vpop.f32.mrb[8].mxu0  ;;  %v312_v46 = vpack.c.bf16 %v680_v43, %v676_v41 }
 0x13b   :  { %v273_v47 = vadd.f32 %v605_v45, %v521_v24  ;;  %v264_v48 = vpop.f32.mrb[9].mxu0  ;;  %v311_v49 = vpack.c.bf16 %v682_v44, %v678_v42 }
 0x13c   :  { %v265_v50 = vadd.f32 %v521_v24, %v264_v48  ;;  %v606_v51 = vpop.f32.mrb[10].mxu0 }
 0x13d   :  { %691 = vtanh.f32 %v273_v47  ;;  %v276_v52 = vadd.f32 %v606_v51, %v521_v24  ;;  %v267_v53 = vpop.f32.mrb[11].mxu0  ;;  %627 = vmatprep.mubr.bf16.mxu1 %v311_v49 }
 0x13e   :  { %693 = vtanh.f32 %v265_v50  ;;  %v268_v54 = vadd.f32 %v521_v24, %v267_v53  ;;  %628 = vmatmul.mubr.bf16.vlgmr.msra.gmra.mrb[0].mxu1 %v312_v46 }
 0x13f   :  { %v684_v55 = vpop.eup %683  ;;  %695 = vtanh.f32 %v276_v52 }
 0x140   :  { %v686_v56 = vpop.eup %685  ;;  %697 = vtanh.f32 %v268_v54 }
 0x141   :  { %v688_v57 = vpop.eup %687 }
 0x142   :  { %v690_v58 = vpop.eup %689  ;;  %v609_v59 = vpop.f32.mrb[12].mxu0  ;;  %v314_v60 = vpack.c.bf16 %v688_v57, %v684_v55 }
 0x143   :  { %v289_v61 = vadd.f32 %v609_v59, %v521_v24  ;;  %v280_v62 = vpop.f32.mrb[13].mxu0  ;;  %v313_v63 = vpack.c.bf16 %v690_v58, %v686_v56 }
 0x144   :  { %v281_v0 = vadd.f32 %v521_v24, %v280_v62  ;;  %v610_v1 = vpop.f32.mrb[14].mxu0 }
 0x145   :  { %699 = vtanh.f32 %v289_v61  ;;  %v292_v2 = vadd.f32 %v610_v1, %v521_v24  ;;  %v283_v3 = vpop.f32.mrb[15].mxu0  ;;  %631 = vmatprep.mubr.bf16.mxu1 %v313_v63 }
 0x146   :  { %701 = vtanh.f32 %v281_v0  ;;  %v284_v4 = vadd.f32 %v521_v24, %v283_v3  ;;  %632 = vmatmul.mubr.bf16.gmra.mrb[4].mxu1 %v314_v60 }
 0x147   :  { %v692_v5 = vpop.eup %691  ;;  %703 = vtanh.f32 %v292_v2 }
 0x148   :  { %v694_v6 = vpop.eup %693  ;;  %705 = vtanh.f32 %v284_v4 }
 0x149   :  { %v696_v7 = vpop.eup %695 }
 0x14a   :  { %v698_v8 = vpop.eup %697  ;;  %v316_v9 = vpack.c.bf16 %v696_v7, %v692_v5 }
 0x14b   :  { %v315_v10 = vpack.c.bf16 %v698_v8, %v694_v6 }
 0x14d   :  { %635 = vmatprep.mubr.bf16.mxu1 %v315_v10 }
 0x14e   :  { %636 = vmatmul.mubr.bf16.gmra.mrb[8].mxu1 %v316_v9 }
 0x14f   :  { %v700_v11 = vpop.eup %699 }
 0x150   :  { %v702_v12 = vpop.eup %701 }
 0x151   :  { %v704_v13 = vpop.eup %703 }
 0x152   :  { %v706_v14 = vpop.eup %705  ;;  %v318_v15 = vpack.c.bf16 %v704_v13, %v700_v11 }
 0x153   :  { %v317_v16 = vpack.c.bf16 %v706_v14, %v702_v12 }
 0x155   :  { %639 = vmatprep.mubr.bf16.mxu1 %v317_v16 }
 0x156   :  { %640 = vmatmul.mubr.bf16.gmra.mrb[12].mxu1 %v318_v15 }
 0x211   :  { %v629_v18 = vpop.f32.mrb[0].mxu1 }
 0x212   :  { %v433_v19 = vadd.f32 %v629_v18, %v538_v17  ;;  %v424_v20 = vpop.f32.mrb[1].mxu1 }
 0x213   :  { %v425_v21 = vadd.f32 %v538_v17, %v424_v20  ;;  %v630_v22 = vpop.f32.mrb[2].mxu1 }
 0x214   :  { %489 = vst [vmem:[#allocation8 + $0x10] sm:$0xff] %v433_v19  ;;  %v436_v23 = vadd.f32 %v630_v22, %v538_v17  ;;  %v427_v24 = vpop.f32.mrb[3].mxu1 }
 0x215   :  { %487 = vst [vmem:[#allocation8] sm:$0xff] %v425_v21  ;;  %v428_v25 = vadd.f32 %v538_v17, %v427_v24 }
 0x216   :  { %490 = vst [vmem:[#allocation8 + $0x18] sm:$0xff] %v436_v23 }
 0x217   :  { %488 = vst [vmem:[#allocation8 + $0x8] sm:$0xff] %v428_v25 }
 0x219   :  { %v633_v26 = vpop.f32.mrb[4].mxu1 }
 0x21a   :  { %v449_v27 = vadd.f32 %v633_v26, %v538_v17  ;;  %v440_v28 = vpop.f32.mrb[5].mxu1 }
 0x21b   :  { %v441_v29 = vadd.f32 %v538_v17, %v440_v28  ;;  %v634_v30 = vpop.f32.mrb[6].mxu1 }
 0x21c   :  { %493 = vst [vmem:[#allocation8 + $0x30] sm:$0xff] %v449_v27  ;;  %v452_v31 = vadd.f32 %v634_v30, %v538_v17  ;;  %v443_v32 = vpop.f32.mrb[7].mxu1 }
 0x21d   :  { %491 = vst [vmem:[#allocation8 + $0x20] sm:$0xff] %v441_v29  ;;  %v444_v33 = vadd.f32 %v538_v17, %v443_v32 }
 0x21e   :  { %494 = vst [vmem:[#allocation8 + $0x38] sm:$0xff] %v452_v31 }
 0x21f   :  { %492 = vst [vmem:[#allocation8 + $0x28] sm:$0xff] %v444_v33 }
 0x221   :  { %v637_v34 = vpop.f32.mrb[8].mxu1 }
 0x222   :  { %v465_v35 = vadd.f32 %v637_v34, %v538_v17  ;;  %v456_v36 = vpop.f32.mrb[9].mxu1 }
 0x223   :  { %v457_v37 = vadd.f32 %v538_v17, %v456_v36  ;;  %v638_v38 = vpop.f32.mrb[10].mxu1 }
 0x224   :  { %497 = vst [vmem:[#allocation8 + $0x50] sm:$0xff] %v465_v35  ;;  %v468_v39 = vadd.f32 %v638_v38, %v538_v17  ;;  %v459_v40 = vpop.f32.mrb[11].mxu1 }
 0x225   :  { %495 = vst [vmem:[#allocation8 + $0x40] sm:$0xff] %v457_v37  ;;  %v460_v41 = vadd.f32 %v538_v17, %v459_v40 }
 0x226   :  { %498 = vst [vmem:[#allocation8 + $0x58] sm:$0xff] %v468_v39 }
 0x227   :  { %496 = vst [vmem:[#allocation8 + $0x48] sm:$0xff] %v460_v41 }
 0x229   :  { %v641_v42 = vpop.f32.mrb[12].mxu1 }
 0x22a   :  { %v481_v43 = vadd.f32 %v641_v42, %v538_v17  ;;  %v472_v44 = vpop.f32.mrb[13].mxu1 }
 0x22b   :  { %v473_v45 = vadd.f32 %v538_v17, %v472_v44  ;;  %v642_v46 = vpop.f32.mrb[14].mxu1 }
 0x22c   :  { %501 = vst [vmem:[#allocation8 + $0x70] sm:$0xff] %v481_v43  ;;  %v484_v47 = vadd.f32 %v642_v46, %v538_v17  ;;  %v475_v48 = vpop.f32.mrb[15].mxu1 }
 0x22d   :  { %499 = vst [vmem:[#allocation8 + $0x60] sm:$0xff] %v473_v45  ;;  %v476_v49 = vadd.f32 %v538_v17, %v475_v48 }
 0x22e   :  { %502 = vst [vmem:[#allocation8 + $0x78] sm:$0xff] %v484_v47 }
 0x22f   :  { %500 = vst [vmem:[#allocation8 + $0x68] sm:$0xff] %v476_v49 }
 0x230   :  { %784 = shalt.err (!%p781_p0)
}
 0x231   :  { %s785_s10 = scalar_lea.hbm %s914_s5, 2048 }
 0x232   :  { %p786_p1 = scmp.ne.s32.totalorder %s914_s5, %s785_s10  ;;  %p789_p2 = scmp.lt.u32.totalorder %s785_s10, %s914_s5 }
 0x234   :  { %p791_p3 = pnand %p789_p2, %p786_p1 }
 0x236   :  { %794 = shalt.err (!%p791_p3)
}
 0x237   :  { %s807_s15 = smov 128   ;;  %s808_s16 = smov 8  }
 0x238   :  { %514 = dma.vmem_to_hbm [thread:$0]  %s509_s6, 2048, %s914_s5, [#allocation4], %s807_s15, %s807_s15, %s808_s16  }
 0x239   :  { %799 = dma.done.wait [#allocation4], 2048  }
 0x23a   :  { %800 = vsyncadd [#allocation4], 4294965248 }
 0x23b   :  { %518 = vsyncpa [#allocation3], 1 }
 0x23c   :  { %519 = vsyncpa [#allocation6], 1 }
 0x23d   :  { %520 = vsyncpa [#allocation4], 1 }

// kernel: tpu_custom_call.1
= control target key start
LH: loop header
LB: loop body
LE: loop exit
PB: predicated region body
PF: predicated region fallthrough
CT: control target
= control target key end

     0   :  { %10 = vsyncpa [#allocation3], 0  ;;  %s909_s0 = inlined_call_operand.hbm [shape: bf16[128,128], index: 0, kind: input, shape index: {}]   ;;  %s910_s1 = inlined_call_operand.hbm [shape: bf16[128,128], index: 1, kind: input, shape index: {}]   ;;  %s911_s2 = inlined_call_operand.vmem [shape: f32[1,128], index: 2, kind: input, shape index: {}]   ;;  %s912_s3 = inlined_call_operand.hbm [shape: bf16[128,128], index: 3, kind: input, shape index: {}]   ;;  %s913_s4 = inlined_call_operand.vmem [shape: f32[1,128], index: 4, kind: input, shape index: {}]   ;;  %s914_s5 = inlined_call_operand.hbm [shape: f32[128,128], index: 5, kind: output, shape index: {}]  }
   0x1   :  { %11 = vsyncpa [#allocation6], 0 }
   0x2   :  { %12 = vsyncpa [#allocation4], 0  ;;  %s801_s18 = smov [#allocation5]   ;;  %s802_s20 = smov [#allocation2]  }
   0x3   :  { %s30_s19 = sshll.u32 %s801_s18, 4  ;;  %s18_s21 = sshll.u32 %s802_s20, 4  ;;  %s31_s19 = int_to_ptr.vmem [resolvable:$true] %s30_s19  ;;  %s839_s21 = int_to_ptr.vmem [resolvable:$true] %s18_s21 }
   0x4   :  { %s707_s24 = scalar_lea.hbm %s910_s1, 1024 }
   0x5   :  { %p708_p0 = scmp.ne.s32.totalorder %s910_s1, %s707_s24  ;;  %p711_p1 = scmp.lt.u32.totalorder %s707_s24, %s910_s1 }
   0x7   :  { %p713_p2 = pnand %p711_p1, %p708_p0 }
   0x9   :  { %716 = shalt.err (!%p713_p2)
}
   0xa   :  { %s717_s29 = scalar_lea.vmem %s31_s19, 1024  ;;  %p722_p4 = scmp.lt.s32.totalorder %s31_s19, %s31_s19 }
   0xb   :  { %p718_p3 = scmp.ne.s32.totalorder %s31_s19, %s717_s29  ;;  %p723_p5 = scmp.lt.s32.totalorder %s717_s29, %s717_s29 }
   0xd   :  { %p724_p6 = por %p723_p5, %p722_p4 }
   0xf   :  { %p725_p7 = pnand %p724_p6, %p718_p3 }
  0x11   :  { %728 = shalt.err (!%p725_p7)
}
  0x12   :  { %s803_s30 = smov 64   ;;  %s804_s6 = smov 4  }
  0x13   :  { %36 = dma.hbm_to_vmem [thread:$0]  %s910_s1, 1024, %s31_s19, [#allocation6], %s803_s30, %s803_s30, %s804_s6  }
  0x14   :  { %s729_s11 = scalar_lea.hbm %s909_s0, 1024 }
  0x15   :  { %p730_p8 = scmp.ne.s32.totalorder %s909_s0, %s729_s11  ;;  %p733_p9 = scmp.lt.u32.totalorder %s729_s11, %s909_s0 }
  0x17   :  { %p735_p10 = pnand %p733_p9, %p730_p8 }
  0x19   :  { %738 = shalt.err (!%p735_p10)
}
  0x1a   :  { %s739_s16 = scalar_lea.vmem %s839_s21, 1024  ;;  %p744_p12 = scmp.lt.s32.totalorder %s839_s21, %s839_s21 }
  0x1b   :  { %p740_p11 = scmp.ne.s32.totalorder %s839_s21, %s739_s16  ;;  %p745_p13 = scmp.lt.s32.totalorder %s739_s16, %s739_s16 }
  0x1d   :  { %p746_p0 = por %p745_p13, %p744_p12 }
  0x1f   :  { %p747_p1 = pnand %p746_p0, %p740_p11 }
  0x21   :  { %750 = shalt.err (!%p747_p1)
}
  0x22   :  { %24 = dma.hbm_to_vmem [thread:$0]  %s909_s0, 1024, %s839_s21, [#allocation3], %s803_s30, %s803_s30, %s804_s6  }
  0x23   :  { %s805_s18 = smov [#allocation7]   ;;  %s751_s23 = scalar_lea.hbm %s912_s3, 1024 }
  0x24   :  { %s44_s19 = sshll.u32 %s805_s18, 4  ;;  %p752_p2 = scmp.ne.s32.totalorder %s912_s3, %s751_s23  ;;  %s45_s19 = int_to_ptr.vmem [resolvable:$true] %s44_s19 }
  0x25   :  { %p755_p3 = scmp.lt.u32.totalorder %s751_s23, %s912_s3 }
  0x27   :  { %p757_p4 = pnand %p755_p3, %p752_p2 }
  0x29   :  { %760 = shalt.err (!%p757_p4)
}
  0x2a   :  { %s761_s28 = scalar_lea.vmem %s45_s19, 1024  ;;  %p766_p6 = scmp.lt.s32.totalorder %s45_s19, %s45_s19 }
  0x2b   :  { %p762_p5 = scmp.ne.s32.totalorder %s45_s19, %s761_s28  ;;  %p767_p7 = scmp.lt.s32.totalorder %s761_s28, %s761_s28 }
  0x2d   :  { %p768_p8 = por %p767_p7, %p766_p6 }
  0x2f   :  { %p769_p9 = pnand %p768_p8, %p762_p5 }
  0x31   :  { %772 = shalt.err (!%p769_p9)
}
  0x32   :  { %50 = dma.hbm_to_vmem [thread:$0]  %s912_s3, 1024, %s45_s19, [#allocation6], %s803_s30, %s803_s30, %s804_s6  }
  0x33   :  { %795 = dma.done.wait [#allocation3], 1024  }
  0x34   :  { %796 = vsyncadd [#allocation3], 4294966272 }
  0x35   :  { %797 = dma.done.wait [#allocation6], 2048  }
  0x36   :  { %798 = vsyncadd [#allocation6], 4294965248  ;;  %v651_v0 = vld [vmem:[#allocation5] sm:$0xff]   ;;  %v652_v1 = vld [vmem:[#allocation5 + $0x8] sm:$0xff]  }
  0x37   :  { %579 = vmatprep.subr.bf16.mxu0 %v651_v0  ;;  %v653_v2 = vld [vmem:[#allocation5 + $0x10] sm:$0xff]   ;;  %v654_v3 = vld [vmem:[#allocation5 + $0x18] sm:$0xff]   ;;  %v659_v4 = vld [vmem:[#allocation2] sm:$0xff]  }
  0x38   :  { %580 = vmatpush3.bf16.msra.mxu0 %v651_v0  ;;  %595 = vmatprep.mubr.bf16.mxu0 %v659_v4  ;;  %v655_v5 = vld [vmem:[#allocation5 + $0x20] sm:$0xff]   ;;  %v656_v6 = vld [vmem:[#allocation5 + $0x28] sm:$0xff]   ;;  %v657_v9 = vld [vmem:[#allocation5 + $0x30] sm:$0xff]  }
  0x39   :  { %581 = vmatprep.subr.bf16.mxu0 %v652_v1  ;;  %v667_v7 = vld [vmem:[#allocation7] sm:$0xff]   ;;  %v668_v8 = vld [vmem:[#allocation7 + $0x8] sm:$0xff]   ;;  %v669_v10 = vld [vmem:[#allocation7 + $0x10] sm:$0xff]  }
  0x3a   :  { %611 = vmatprep.subr.bf16.mxu1 %v667_v7  ;;  %v658_v11 = vld [vmem:[#allocation5 + $0x38] sm:$0xff]   ;;  %v660_v12 = vld [vmem:[#allocation2 + $0x8] sm:$0xff]   ;;  %v661_v13 = vld [vmem:[#allocation2 + $0x10] sm:$0xff]  }
  0x3b   :  { %612 = vmatpush3.bf16.msra.mxu1 %v667_v7  ;;  %v662_v14 = vld [vmem:[#allocation2 + $0x18] sm:$0xff]   ;;  %v663_v15 = vld [vmem:[#allocation2 + $0x20] sm:$0xff]   ;;  %v664_v16 = vld [vmem:[#allocation2 + $0x28] sm:$0xff]  }
  0x3c   :  { %582 = vmatpush3.bf16.msra.mxu0 %v652_v1  ;;  %613 = vmatprep.subr.bf16.mxu1 %v668_v8  ;;  %v665_v17 = vld [vmem:[#allocation2 + $0x30] sm:$0xff]   ;;  %v666_v18 = vld [vmem:[#allocation2 + $0x38] sm:$0xff]   ;;  %v671_v20 = vld [vmem:[#allocation7 + $0x20] sm:$0xff]  }
  0x3d   :  { %583 = vmatprep.subr.bf16.mxu0 %v653_v2  ;;  %v670_v19 = vld [vmem:[#allocation7 + $0x18] sm:$0xff]   ;;  %v672_v21 = vld [vmem:[#allocation7 + $0x28] sm:$0xff]   ;;  %v673_v22 = vld [vmem:[#allocation7 + $0x30] sm:$0xff]  }
  0x3e   :  { %v674_v23 = vld [vmem:[#allocation7 + $0x38] sm:$0xff]   ;;  %v521_v24 = vld [vmem:[%s911_s2] ss:$0 sm:$0xff] }
  0x3f   :  { %614 = vmatpush3.bf16.msra.mxu1 %v668_v8 }
  0x40   :  { %584 = vmatpush3.bf16.msra.mxu0 %v653_v2  ;;  %615 = vmatprep.subr.bf16.mxu1 %v669_v10 }
  0x41   :  { %585 = vmatprep.subr.bf16.mxu0 %v654_v3 }
  0x43   :  { %616 = vmatpush3.bf16.msra.mxu1 %v669_v10 }
  0x44   :  { %586 = vmatpush3.bf16.msra.mxu0 %v654_v3  ;;  %617 = vmatprep.subr.bf16.mxu1 %v670_v19 }
  0x45   :  { %587 = vmatprep.subr.bf16.mxu0 %v655_v5 }
  0x47   :  { %618 = vmatpush3.bf16.msra.mxu1 %v670_v19 }
  0x48   :  { %588 = vmatpush3.bf16.msra.mxu0 %v655_v5  ;;  %619 = vmatprep.subr.bf16.mxu1 %v671_v20 }
  0x49   :  { %589 = vmatprep.subr.bf16.mxu0 %v656_v6 }
  0x4b   :  { %620 = vmatpush3.bf16.msra.mxu1 %v671_v20 }
  0x4c   :  { %590 = vmatpush3.bf16.msra.mxu0 %v656_v6  ;;  %621 = vmatprep.subr.bf16.mxu1 %v672_v21 }
  0x4d   :  { %591 = vmatprep.subr.bf16.mxu0 %v657_v9 }
  0x4f   :  { %622 = vmatpush3.bf16.msra.mxu1 %v672_v21 }
  0x50   :  { %592 = vmatpush3.bf16.msra.mxu0 %v657_v9  ;;  %623 = vmatprep.subr.bf16.mxu1 %v673_v22 }
  0x51   :  { %593 = vmatprep.subr.bf16.mxu0 %v658_v11 }
  0x53   :  { %624 = vmatpush3.bf16.msra.mxu1 %v673_v22 }
  0x54   :  { %594 = vmatpush3.bf16.msra.mxu0 %v658_v11  ;;  %625 = vmatprep.subr.bf16.mxu1 %v674_v23 }
  0x57   :  { %596 = vmatmul.mubr.bf16.vlgmr.msra.gmra.mrb[0].mxu0 %v660_v12  ;;  %626 = vmatpush3.bf16.msra.mxu1 %v674_v23 }
  0x58   :  { %599 = vmatprep.mubr.bf16.mxu0 %v661_v13 }
  0x5f   :  { %600 = vmatmul.mubr.bf16.gmra.mrb[4].mxu0 %v662_v14 }
  0x60   :  { %603 = vmatprep.mubr.bf16.mxu0 %v663_v15 }
  0x67   :  { %604 = vmatmul.mubr.bf16.gmra.mrb[8].mxu0 %v664_v16 }
  0x68   :  { %607 = vmatprep.mubr.bf16.mxu0 %v665_v17  ;;  %v538_v17 = vld [vmem:[%s913_s4] ss:$0 sm:$0xff]  ;;  %s806_s4 = smov [#allocation8]  }
  0x69   :  { %s508_s6 = sshll.u32 %s806_s4, 4  ;;  %s509_s6 = int_to_ptr.vmem [resolvable:$true] %s508_s6 }
  0x6a   :  { %s773_s7 = scalar_lea.vmem %s509_s6, 2048  ;;  %p778_p11 = scmp.lt.s32.totalorder %s509_s6, %s509_s6 }
  0x6b   :  { %p774_p10 = scmp.ne.s32.totalorder %s509_s6, %s773_s7  ;;  %p779_p12 = scmp.lt.s32.totalorder %s773_s7, %s773_s7 }
  0x6d   :  { %p780_p13 = por %p779_p12, %p778_p11 }
  0x6f   :  { %608 = vmatmul.mubr.bf16.gmra.mrb[12].mxu0 %v666_v18  ;;  %p781_p0 = pnand %p780_p13, %p774_p10 }
 0x12a   :  { %v597_v25 = vpop.f32.mrb[0].mxu0 }
 0x12b   :  { %v241_v26 = vadd.f32 %v597_v25, %v521_v24  ;;  %v232_v27 = vpop.f32.mrb[1].mxu0 }
 0x12c   :  { %v233_v28 = vadd.f32 %v521_v24, %v232_v27  ;;  %v598_v29 = vpop.f32.mrb[2].mxu0 }
 0x12d   :  { %675 = vtanh.f32 %v241_v26  ;;  %v244_v30 = vadd.f32 %v598_v29, %v521_v24  ;;  %v235_v31 = vpop.f32.mrb[3].mxu0 }
 0x12e   :  { %677 = vtanh.f32 %v233_v28  ;;  %v236_v32 = vadd.f32 %v521_v24, %v235_v31 }
 0x12f   :  { %679 = vtanh.f32 %v244_v30 }
 0x130   :  { %681 = vtanh.f32 %v236_v32 }
 0x132   :  { %v601_v33 = vpop.f32.mrb[4].mxu0 }
 0x133   :  { %v257_v34 = vadd.f32 %v601_v33, %v521_v24  ;;  %v248_v35 = vpop.f32.mrb[5].mxu0 }
 0x134   :  { %v249_v36 = vadd.f32 %v521_v24, %v248_v35  ;;  %v602_v37 = vpop.f32.mrb[6].mxu0 }
 0x135   :  { %683 = vtanh.f32 %v257_v34  ;;  %v260_v38 = vadd.f32 %v602_v37, %v521_v24  ;;  %v251_v39 = vpop.f32.mrb[7].mxu0 }
 0x136   :  { %685 = vtanh.f32 %v249_v36  ;;  %v252_v40 = vadd.f32 %v521_v24, %v251_v39 }
 0x137   :  { %v676_v41 = vpop.eup %675  ;;  %687 = vtanh.f32 %v260_v38 }
 0x138   :  { %v678_v42 = vpop.eup %677  ;;  %689 = vtanh.f32 %v252_v40 }
 0x139   :  { %v680_v43 = vpop.eup %679 }
 0x13a   :  { %v682_v44 = vpop.eup %681  ;;  %v605_v45 = vpop.f32.mrb[8].mxu0  ;;  %v312_v46 = vpack.c.bf16 %v680_v43, %v676_v41 }
 0x13b   :  { %v273_v47 = vadd.f32 %v605_v45, %v521_v24  ;;  %v264_v48 = vpop.f32.mrb[9].mxu0  ;;  %v311_v49 = vpack.c.bf16 %v682_v44, %v678_v42 }
 0x13c   :  { %v265_v50 = vadd.f32 %v521_v24, %v264_v48  ;;  %v606_v51 = vpop.f32.mrb[10].mxu0 }
 0x13d   :  { %691 = vtanh.f32 %v273_v47  ;;  %v276_v52 = vadd.f32 %v606_v51, %v521_v24  ;;  %v267_v53 = vpop.f32.mrb[11].mxu0  ;;  %627 = vmatprep.mubr.bf16.mxu1 %v311_v49 }
 0x13e   :  { %693 = vtanh.f32 %v265_v50  ;;  %v268_v54 = vadd.f32 %v521_v24, %v267_v53  ;;  %628 = vmatmul.mubr.bf16.vlgmr.msra.gmra.mrb[0].mxu1 %v312_v46 }
 0x13f   :  { %v684_v55 = vpop.eup %683  ;;  %695 = vtanh.f32 %v276_v52 }
 0x140   :  { %v686_v56 = vpop.eup %685  ;;  %697 = vtanh.f32 %v268_v54 }
 0x141   :  { %v688_v57 = vpop.eup %687 }
 0x142   :  { %v690_v58 = vpop.eup %689  ;;  %v609_v59 = vpop.f32.mrb[12].mxu0  ;;  %v314_v60 = vpack.c.bf16 %v688_v57, %v684_v55 }
 0x143   :  { %v289_v61 = vadd.f32 %v609_v59, %v521_v24  ;;  %v280_v62 = vpop.f32.mrb[13].mxu0  ;;  %v313_v63 = vpack.c.bf16 %v690_v58, %v686_v56 }
 0x144   :  { %v281_v0 = vadd.f32 %v521_v24, %v280_v62  ;;  %v610_v1 = vpop.f32.mrb[14].mxu0 }
 0x145   :  { %699 = vtanh.f32 %v289_v61  ;;  %v292_v2 = vadd.f32 %v610_v1, %v521_v24  ;;  %v283_v3 = vpop.f32.mrb[15].mxu0  ;;  %631 = vmatprep.mubr.bf16.mxu1 %v313_v63 }
 0x146   :  { %701 = vtanh.f32 %v281_v0  ;;  %v284_v4 = vadd.f32 %v521_v24, %v283_v3  ;;  %632 = vmatmul.mubr.bf16.gmra.mrb[4].mxu1 %v314_v60 }
 0x147   :  { %v692_v5 = vpop.eup %691  ;;  %703 = vtanh.f32 %v292_v2 }
 0x148   :  { %v694_v6 = vpop.eup %693  ;;  %705 = vtanh.f32 %v284_v4 }
 0x149   :  { %v696_v7 = vpop.eup %695 }
 0x14a   :  { %v698_v8 = vpop.eup %697  ;;  %v316_v9 = vpack.c.bf16 %v696_v7, %v692_v5 }
 0x14b   :  { %v315_v10 = vpack.c.bf16 %v698_v8, %v694_v6 }
 0x14d   :  { %635 = vmatprep.mubr.bf16.mxu1 %v315_v10 }
 0x14e   :  { %636 = vmatmul.mubr.bf16.gmra.mrb[8].mxu1 %v316_v9 }
 0x14f   :  { %v700_v11 = vpop.eup %699 }
 0x150   :  { %v702_v12 = vpop.eup %701 }
 0x151   :  { %v704_v13 = vpop.eup %703 }
 0x152   :  { %v706_v14 = vpop.eup %705  ;;  %v318_v15 = vpack.c.bf16 %v704_v13, %v700_v11 }
 0x153   :  { %v317_v16 = vpack.c.bf16 %v706_v14, %v702_v12 }
 0x155   :  { %639 = vmatprep.mubr.bf16.mxu1 %v317_v16 }
 0x156   :  { %640 = vmatmul.mubr.bf16.gmra.mrb[12].mxu1 %v318_v15 }
 0x211   :  { %v629_v18 = vpop.f32.mrb[0].mxu1 }
 0x212   :  { %v433_v19 = vadd.f32 %v629_v18, %v538_v17  ;;  %v424_v20 = vpop.f32.mrb[1].mxu1 }
 0x213   :  { %v425_v21 = vadd.f32 %v538_v17, %v424_v20  ;;  %v630_v22 = vpop.f32.mrb[2].mxu1 }
 0x214   :  { %489 = vst [vmem:[#allocation8 + $0x10] sm:$0xff] %v433_v19  ;;  %v436_v23 = vadd.f32 %v630_v22, %v538_v17  ;;  %v427_v24 = vpop.f32.mrb[3].mxu1 }
 0x215   :  { %487 = vst [vmem:[#allocation8] sm:$0xff] %v425_v21  ;;  %v428_v25 = vadd.f32 %v538_v17, %v427_v24 }
 0x216   :  { %490 = vst [vmem:[#allocation8 + $0x18] sm:$0xff] %v436_v23 }
 0x217   :  { %488 = vst [vmem:[#allocation8 + $0x8] sm:$0xff] %v428_v25 }
 0x219   :  { %v633_v26 = vpop.f32.mrb[4].mxu1 }
 0x21a   :  { %v449_v27 = vadd.f32 %v633_v26, %v538_v17  ;;  %v440_v28 = vpop.f32.mrb[5].mxu1 }
 0x21b   :  { %v441_v29 = vadd.f32 %v538_v17, %v440_v28  ;;  %v634_v30 = vpop.f32.mrb[6].mxu1 }
 0x21c   :  { %493 = vst [vmem:[#allocation8 + $0x30] sm:$0xff] %v449_v27  ;;  %v452_v31 = vadd.f32 %v634_v30, %v538_v17  ;;  %v443_v32 = vpop.f32.mrb[7].mxu1 }
 0x21d   :  { %491 = vst [vmem:[#allocation8 + $0x20] sm:$0xff] %v441_v29  ;;  %v444_v33 = vadd.f32 %v538_v17, %v443_v32 }
 0x21e   :  { %494 = vst [vmem:[#allocation8 + $0x38] sm:$0xff] %v452_v31 }
 0x21f   :  { %492 = vst [vmem:[#allocation8 + $0x28] sm:$0xff] %v444_v33 }
 0x221   :  { %v637_v34 = vpop.f32.mrb[8].mxu1 }
 0x222   :  { %v465_v35 = vadd.f32 %v637_v34, %v538_v17  ;;  %v456_v36 = vpop.f32.mrb[9].mxu1 }
 0x223   :  { %v457_v37 = vadd.f32 %v538_v17, %v456_v36  ;;  %v638_v38 = vpop.f32.mrb[10].mxu1 }
 0x224   :  { %497 = vst [vmem:[#allocation8 + $0x50] sm:$0xff] %v465_v35  ;;  %v468_v39 = vadd.f32 %v638_v38, %v538_v17  ;;  %v459_v40 = vpop.f32.mrb[11].mxu1 }
 0x225   :  { %495 = vst [vmem:[#allocation8 + $0x40] sm:$0xff] %v457_v37  ;;  %v460_v41 = vadd.f32 %v538_v17, %v459_v40 }
 0x226   :  { %498 = vst [vmem:[#allocation8 + $0x58] sm:$0xff] %v468_v39 }
 0x227   :  { %496 = vst [vmem:[#allocation8 + $0x48] sm:$0xff] %v460_v41 }
 0x229   :  { %v641_v42 = vpop.f32.mrb[12].mxu1 }
 0x22a   :  { %v481_v43 = vadd.f32 %v641_v42, %v538_v17  ;;  %v472_v44 = vpop.f32.mrb[13].mxu1 }
 0x22b   :  { %v473_v45 = vadd.f32 %v538_v17, %v472_v44  ;;  %v642_v46 = vpop.f32.mrb[14].mxu1 }
 0x22c   :  { %501 = vst [vmem:[#allocation8 + $0x70] sm:$0xff] %v481_v43  ;;  %v484_v47 = vadd.f32 %v642_v46, %v538_v17  ;;  %v475_v48 = vpop.f32.mrb[15].mxu1 }
 0x22d   :  { %499 = vst [vmem:[#allocation8 + $0x60] sm:$0xff] %v473_v45  ;;  %v476_v49 = vadd.f32 %v538_v17, %v475_v48 }
 0x22e   :  { %502 = vst [vmem:[#allocation8 + $0x78] sm:$0xff] %v484_v47 }
 0x22f   :  { %500 = vst [vmem:[#allocation8 + $0x68] sm:$0xff] %v476_v49 }
 0x230   :  { %784 = shalt.err (!%p781_p0)
}
 0x231   :  { %s785_s10 = scalar_lea.hbm %s914_s5, 2048 }
 0x232   :  { %p786_p1 = scmp.ne.s32.totalorder %s914_s5, %s785_s10  ;;  %p789_p2 = scmp.lt.u32.totalorder %s785_s10, %s914_s5 }
 0x234   :  { %p791_p3 = pnand %p789_p2, %p786_p1 }
 0x236   :  { %794 = shalt.err (!%p791_p3)
}
 0x237   :  { %s807_s15 = smov 128   ;;  %s808_s16 = smov 8  }
 0x238   :  { %514 = dma.vmem_to_hbm [thread:$0]  %s509_s6, 2048, %s914_s5, [#allocation4], %s807_s15, %s807_s15, %s808_s16  }
 0x239   :  { %799 = dma.done.wait [#allocation4], 2048  }
 0x23a   :  { %800 = vsyncadd [#allocation4], 4294965248 }
 0x23b   :  { %518 = vsyncpa [#allocation3], 1 }
 0x23c   :  { %519 = vsyncpa [#allocation6], 1 }
 0x23d   :  { %520 = vsyncpa [#allocation4], 1 }

</bundles_post_ra>
